<compile_context>
chip_gen: v7x
topology: tpu7x:2x2x1
jax: 0.10.0
libtpu: 0.0.40
codegen_flags: <defaults>
</compile_context>

<pallas_src>
import functools

import numpy as np
import jax
import jax.numpy as jnp
from jax import lax
from jax.experimental import pallas as pl
from jax.experimental.pallas import tpu as pltpu  # noqa: F401  (CompilerParams at production shapes)

_BN_EPS = 1e-5


# -----------------------------------------------------------------------------
# Fused kernel: im2col Conv1d + BatchNorm (batch stats) + ELU + MaxPool1d
# -----------------------------------------------------------------------------

def _fused_conv_bn_elu_pool_kernel(xcol_ref, w_ref, b_ref, g_ref, beta_ref,
                                   sel_ref, mask_ref, o_ref, *, eps):
    """All refs are whole arrays resident in VMEM (no grid).

    xcol_ref: (N, 3*Cp)   im2col of the circularly padded input, N = B*l_out
    w_ref:    (3*Cp, Cp)  stacked per-tap [C_in, C_out] conv weights
    b_ref / g_ref / beta_ref: (1, Cp)
    sel_ref:  (3, P, N)   constant block-diagonal one-hot pool-gather matrices, P = B*l_pool
    mask_ref: (3, P, 1)   constant additive -1e30 mask for out-of-range pool taps
    o_ref:    (P, Cp)
    """
    # ---- Conv1d(k=3, circular pad) as ONE im2col matmul (MXU) ----------------
    y = jnp.dot(xcol_ref[...], w_ref[...],
                preferred_element_type=jnp.float32) + b_ref[...]          # [N, Cp]

    # ---- BatchNorm1d, training-mode batch statistics (biased var, like torch)
    # Centered variance avoids E[x^2]-E[x]^2 cancellation.  Padded channels are
    # all-zero -> mean=var=0 -> scale=shift=0, harmless (sliced away outside).
    mean = jnp.mean(y, axis=0, keepdims=True)                             # [1, Cp]
    centered = y - mean
    var = jnp.mean(centered * centered, axis=0, keepdims=True)
    scale = g_ref[...] * lax.rsqrt(var + eps)
    yn = centered * scale + beta_ref[...]                                 # [N, Cp]

    # ---- ELU(alpha=1): x if x > 0 else exp(x) - 1 (clamp exp arg) ------------
    ya = jnp.where(yn > 0, yn, jnp.exp(jnp.minimum(yn, 0.0)) - 1.0)

    # ---- MaxPool1d(k=3, s=2, p=1): 3 constant one-hot selection matmuls ------
    # Out-of-range taps get additive -1e30 (safe: ELU output >= -1, so the
    # masked tap can never win the max -- matches torch's -inf padding).
    pooled = None
    for t in range(3):
        tap = jnp.dot(sel_ref[t], ya,
                      preferred_element_type=jnp.float32) + mask_ref[t]   # [P, Cp]
        pooled = tap if pooled is None else jnp.maximum(pooled, tap)

    o_ref[...] = pooled.astype(o_ref.dtype)


# -----------------------------------------------------------------------------
# Wrapper
# -----------------------------------------------------------------------------

@jax.jit
def conv_layer_forward(x, w_conv, b_conv, gamma, beta):
    """Pallas implementation of ConvLayer.forward.

    x:      [B, L, C]   (module input layout; it permutes to NCW internally)
    w_conv: [C, C, 3]   PyTorch Conv1d weight (C_out, C_in, K)
    b_conv: [C]
    gamma/beta: [C]     BatchNorm1d affine parameters
    returns [B, L_pool, C]
    """
    B, L, C = x.shape
    l_out = L + 2                       # conv: circular padding=2, kernel=3
    l_pool = (l_out - 1) // 2 + 1       # maxpool: kernel=3, stride=2, padding=1
    Cp = ((C + 127) // 128) * 128       # lane-pad channels to a multiple of 128
    N = B * l_out
    P = B * l_pool

    # ---- wrapper-side layout plumbing only (no hot compute) ------------------
    # circular pad the length axis by 2 on each side (F.pad(..., mode='circular'))
    xp = jnp.concatenate([x[:, L - 2:, :], x, x[:, :2, :]], axis=1)       # [B, L+4, C]
    xp = jnp.pad(xp, ((0, 0), (0, 0), (0, Cp - C)))                        # lane pad
    # im2col: lane-concat of the 3 shifted slices -> one K = 3*Cp matmul
    xcol = jnp.concatenate(
        [xp[:, 0:l_out], xp[:, 1:l_out + 1], xp[:, 2:l_out + 2]],
        axis=-1).reshape(N, 3 * Cp)                                        # [N, 3*Cp]

    # conv weight [C_out, C_in, 3] -> per-tap [C_in, C_out], pad, stack -> [3*Cp, Cp]
    w_taps = jnp.pad(jnp.transpose(w_conv, (2, 1, 0)),
                     ((0, 0), (0, Cp - C), (0, Cp - C)))                   # [3, Cp, Cp]
    w_col = w_taps.reshape(3 * Cp, Cp)

    b_pad = jnp.pad(b_conv, (0, Cp - C)).reshape(1, Cp)
    g_pad = jnp.pad(gamma, (0, Cp - C)).reshape(1, Cp)
    beta_pad = jnp.pad(beta, (0, Cp - C)).reshape(1, Cp)

    # Compile-time constant MaxPool selection matrices (block-diagonal over batch)
    # and out-of-range masks, built once from static shapes (numpy -> XLA constants).
    sel_np = np.zeros((3, P, N), np.float32)
    mask_np = np.zeros((3, P, 1), np.float32)
    for t in range(3):
        for b in range(B):
            for i in range(l_pool):
                r = 2 * i + t - 1                  # conv row feeding pool row i, tap t
                if 0 <= r < l_out:
                    sel_np[t, b * l_pool + i, b * l_out + r] = 1.0
                else:
                    mask_np[t, b * l_pool + i, 0] = -1e30
    sel = jnp.asarray(sel_np)
    mask = jnp.asarray(mask_np)

    # Single fused pallas_call, no grid: whole (tiny) problem resident in VMEM.
    out_flat = pl.pallas_call(
        functools.partial(_fused_conv_bn_elu_pool_kernel, eps=float(_BN_EPS)),
        out_shape=jax.ShapeDtypeStruct((P, Cp), jnp.float32),
    )(xcol, w_col, b_pad, g_pad, beta_pad, sel, mask)

    # layout-only: un-flatten batch and drop the lane padding
    return out_flat.reshape(B, l_pool, Cp)[:, :, :C]


# -----------------------------------------------------------------------------
# Pure-JAX reference (for a sanity check against the fused kernel)
# -----------------------------------------------------------------------------

def _reference_forward(x, w_conv, b_conv, gamma, beta):
    B, L, C = x.shape
    l_out = L + 2
    xp = jnp.concatenate([x[:, L - 2:, :], x, x[:, :2, :]], axis=1)       # [B, L+4, C]
    y = b_conv + sum(
        jnp.einsum('blc,oc->blo', xp[:, t:t + l_out, :], w_conv[:, :, t],
                   precision=lax.Precision.HIGHEST)
        for t in range(3))                                                 # [B, l_out, C]
    mean = jnp.mean(y, axis=(0, 1))
    var = jnp.mean((y - mean) ** 2, axis=(0, 1))
    yn = (y - mean) * gamma / jnp.sqrt(var + _BN_EPS) + beta
    ya = jnp.where(yn > 0, yn, jnp.expm1(jnp.minimum(yn, 0.0)))
    neg = jnp.full((B, 1, C), -jnp.inf, ya.dtype)
    yp = jnp.concatenate([neg, ya, neg], axis=1)                          # [B, l_out+2, C]
    l_pool = (l_out - 1) // 2 + 1
    return jnp.stack([jnp.max(yp[:, 2 * i:2 * i + 3, :], axis=1)
                      for i in range(l_pool)], axis=1)


# -----------------------------------------------------------------------------
# Main
# -----------------------------------------------------------------------------

if __name__ == "__main__":
    B, L, C = 2, 16, 32   # batch, sequence length, c_in

    key = jax.random.PRNGKey(0)
    k_x, k_w, k_b, k_g, k_bt = jax.random.split(key, 5)

    x = jax.random.normal(k_x, (B, L, C), jnp.float32)
    w_conv = 0.1 * jax.random.normal(k_w, (C, C, 3), jnp.float32)   # torch Conv1d weight layout
    b_conv = 0.1 * jax.random.normal(k_b, (C,), jnp.float32)
    gamma = 1.0 + 0.1 * jax.random.normal(k_g, (C,), jnp.float32)
    beta = 0.1 * jax.random.normal(k_bt, (C,), jnp.float32)

    out = jax.block_until_ready(conv_layer_forward(x, w_conv, b_conv, gamma, beta))
    ref = jax.block_until_ready(_reference_forward(x, w_conv, b_conv, gamma, beta))

    l_pool = ((L + 2) - 1) // 2 + 1
    assert out.shape == (B, l_pool, C), out.shape
    assert bool(jnp.all(jnp.isfinite(out)))
    assert bool(jnp.allclose(out, ref, rtol=2e-2, atol=2e-2)), \
        float(jnp.max(jnp.abs(out - ref)))
    print("KERNEL_OK")
</pallas_src>

<mosaic_0001>
module attributes {stable_mosaic.version = 11 : i64} {
  func.func @_fused_conv_bn_elu_pool_kernel(%arg0: memref<36x384xf32, #tpu.memory_space<vmem>>, %arg1: memref<384x128xf32, #tpu.memory_space<vmem>>, %arg2: memref<1x128xf32, #tpu.memory_space<vmem>>, %arg3: memref<1x128xf32, #tpu.memory_space<vmem>>, %arg4: memref<1x128xf32, #tpu.memory_space<vmem>>, %arg5: memref<3x18x36xf32, #tpu.memory_space<vmem>>, %arg6: memref<3x18x1xf32, #tpu.memory_space<vmem>>, %arg7: memref<18x128xf32, #tpu.memory_space<vmem>>) attributes {dimension_semantics = [], scalar_prefetch = 0 : i64, scratch_operands = 0 : i64, tpu.core_type = #tpu.core_type<tc>} {
    %c0 = arith.constant 0 : index
    %c0_0 = arith.constant 0 : index
    %0 = vector.load %arg0[%c0, %c0_0] : memref<36x384xf32, #tpu.memory_space<vmem>>, vector<36x384xf32>
    %c0_1 = arith.constant 0 : index
    %c0_2 = arith.constant 0 : index
    %1 = vector.load %arg1[%c0_1, %c0_2] : memref<384x128xf32, #tpu.memory_space<vmem>>, vector<384x128xf32>
    %cst = arith.constant dense<0.000000e+00> : vector<36x128xf32>
    %2 = tpu.matmul %0, %1, %cst {dimension_numbers = #tpu.dot_dimension_numbers<[1], [0], [0], [1], [0, 0, 1, 1], [], []>} : vector<36x384xf32>, vector<384x128xf32>, vector<36x128xf32> -> vector<36x128xf32>
    %c0_3 = arith.constant 0 : index
    %c0_4 = arith.constant 0 : index
    %3 = vector.load %arg2[%c0_3, %c0_4] : memref<1x128xf32, #tpu.memory_space<vmem>>, vector<1x128xf32>
    %4 = vector.broadcast %3 : vector<1x128xf32> to vector<36x128xf32>
    %5 = arith.addf %2, %4 : vector<36x128xf32>
    %cst_5 = arith.constant dense<0.000000e+00> : vector<128xf32>
    %6 = vector.multi_reduction <add>, %5, %cst_5 [0] : vector<36x128xf32> to vector<128xf32>
    %7 = vector.shape_cast %6 : vector<128xf32> to vector<1x128xf32>
    %cst_6 = arith.constant 3.600000e+01 : f32
    %8 = vector.broadcast %cst_6 : f32 to vector<1x128xf32>
    %9 = arith.divf %7, %8 : vector<1x128xf32>
    %10 = vector.broadcast %9 : vector<1x128xf32> to vector<36x128xf32>
    %11 = arith.subf %5, %10 : vector<36x128xf32>
    %12 = arith.mulf %11, %11 : vector<36x128xf32>
    %cst_7 = arith.constant dense<0.000000e+00> : vector<128xf32>
    %13 = vector.multi_reduction <add>, %12, %cst_7 [0] : vector<36x128xf32> to vector<128xf32>
    %14 = vector.shape_cast %13 : vector<128xf32> to vector<1x128xf32>
    %cst_8 = arith.constant 3.600000e+01 : f32
    %15 = vector.broadcast %cst_8 : f32 to vector<1x128xf32>
    %16 = arith.divf %14, %15 : vector<1x128xf32>
    %c0_9 = arith.constant 0 : index
    %c0_10 = arith.constant 0 : index
    %17 = vector.load %arg3[%c0_9, %c0_10] : memref<1x128xf32, #tpu.memory_space<vmem>>, vector<1x128xf32>
    %cst_11 = arith.constant 9.99999974E-6 : f32
    %18 = vector.broadcast %cst_11 : f32 to vector<1x128xf32>
    %19 = arith.addf %16, %18 : vector<1x128xf32>
    %20 = math.rsqrt %19 : vector<1x128xf32>
    %21 = arith.mulf %17, %20 : vector<1x128xf32>
    %22 = vector.broadcast %21 : vector<1x128xf32> to vector<36x128xf32>
    %23 = arith.mulf %11, %22 : vector<36x128xf32>
    %c0_12 = arith.constant 0 : index
    %c0_13 = arith.constant 0 : index
    %24 = vector.load %arg4[%c0_12, %c0_13] : memref<1x128xf32, #tpu.memory_space<vmem>>, vector<1x128xf32>
    %25 = vector.broadcast %24 : vector<1x128xf32> to vector<36x128xf32>
    %26 = arith.addf %23, %25 : vector<36x128xf32>
    %cst_14 = arith.constant 0.000000e+00 : f32
    %27 = vector.broadcast %cst_14 : f32 to vector<36x128xf32>
    %28 = arith.cmpf ogt, %26, %27 : vector<36x128xf32>
    %cst_15 = arith.constant 0.000000e+00 : f32
    %29 = vector.broadcast %cst_15 : f32 to vector<36x128xf32>
    %30 = arith.minimumf %26, %29 : vector<36x128xf32>
    %31 = math.exp %30 : vector<36x128xf32>
    %cst_16 = arith.constant 1.000000e+00 : f32
    %32 = vector.broadcast %cst_16 : f32 to vector<36x128xf32>
    %33 = arith.subf %31, %32 : vector<36x128xf32>
    %34 = arith.select %28, %26, %33 : vector<36x128xi1>, vector<36x128xf32>
    %c0_17 = arith.constant 0 : index
    %c0_18 = arith.constant 0 : index
    %c0_19 = arith.constant 0 : index
    %35 = vector.load %arg5[%c0_17, %c0_18, %c0_19] : memref<3x18x36xf32, #tpu.memory_space<vmem>>, vector<1x18x36xf32>
    %36 = vector.shape_cast %35 : vector<1x18x36xf32> to vector<18x36xf32>
    %cst_20 = arith.constant dense<0.000000e+00> : vector<18x128xf32>
    %37 = tpu.matmul %36, %34, %cst_20 {dimension_numbers = #tpu.dot_dimension_numbers<[1], [0], [0], [1], [0, 0, 1, 1], [], []>} : vector<18x36xf32>, vector<36x128xf32>, vector<18x128xf32> -> vector<18x128xf32>
    %c0_21 = arith.constant 0 : index
    %c0_22 = arith.constant 0 : index
    %c0_23 = arith.constant 0 : index
    %38 = vector.load %arg6[%c0_21, %c0_22, %c0_23] : memref<3x18x1xf32, #tpu.memory_space<vmem>>, vector<1x18x1xf32>
    %39 = vector.shape_cast %38 : vector<1x18x1xf32> to vector<18x1xf32>
    %40 = vector.broadcast %39 : vector<18x1xf32> to vector<18x128xf32>
    %41 = arith.addf %37, %40 : vector<18x128xf32>
    %c1 = arith.constant 1 : index
    %c0_24 = arith.constant 0 : index
    %c0_25 = arith.constant 0 : index
    %42 = vector.load %arg5[%c1, %c0_24, %c0_25] : memref<3x18x36xf32, #tpu.memory_space<vmem>>, vector<1x18x36xf32>
    %43 = vector.shape_cast %42 : vector<1x18x36xf32> to vector<18x36xf32>
    %cst_26 = arith.constant dense<0.000000e+00> : vector<18x128xf32>
    %44 = tpu.matmul %43, %34, %cst_26 {dimension_numbers = #tpu.dot_dimension_numbers<[1], [0], [0], [1], [0, 0, 1, 1], [], []>} : vector<18x36xf32>, vector<36x128xf32>, vector<18x128xf32> -> vector<18x128xf32>
    %c1_27 = arith.constant 1 : index
    %c0_28 = arith.constant 0 : index
    %c0_29 = arith.constant 0 : index
    %45 = vector.load %arg6[%c1_27, %c0_28, %c0_29] : memref<3x18x1xf32, #tpu.memory_space<vmem>>, vector<1x18x1xf32>
    %46 = vector.shape_cast %45 : vector<1x18x1xf32> to vector<18x1xf32>
    %47 = vector.broadcast %46 : vector<18x1xf32> to vector<18x128xf32>
    %48 = arith.addf %44, %47 : vector<18x128xf32>
    %49 = arith.maximumf %41, %48 : vector<18x128xf32>
    %c2 = arith.constant 2 : index
    %c0_30 = arith.constant 0 : index
    %c0_31 = arith.constant 0 : index
    %50 = vector.load %arg5[%c2, %c0_30, %c0_31] : memref<3x18x36xf32, #tpu.memory_space<vmem>>, vector<1x18x36xf32>
    %51 = vector.shape_cast %50 : vector<1x18x36xf32> to vector<18x36xf32>
    %cst_32 = arith.constant dense<0.000000e+00> : vector<18x128xf32>
    %52 = tpu.matmul %51, %34, %cst_32 {dimension_numbers = #tpu.dot_dimension_numbers<[1], [0], [0], [1], [0, 0, 1, 1], [], []>} : vector<18x36xf32>, vector<36x128xf32>, vector<18x128xf32> -> vector<18x128xf32>
    %c2_33 = arith.constant 2 : index
    %c0_34 = arith.constant 0 : index
    %c0_35 = arith.constant 0 : index
    %53 = vector.load %arg6[%c2_33, %c0_34, %c0_35] : memref<3x18x1xf32, #tpu.memory_space<vmem>>, vector<1x18x1xf32>
    %54 = vector.shape_cast %53 : vector<1x18x1xf32> to vector<18x1xf32>
    %55 = vector.broadcast %54 : vector<18x1xf32> to vector<18x128xf32>
    %56 = arith.addf %52, %55 : vector<18x128xf32>
    %57 = arith.maximumf %49, %56 : vector<18x128xf32>
    %c0_36 = arith.constant 0 : index
    %c0_37 = arith.constant 0 : index
    %58 = vector.load %arg7[%c0_36, %c0_37] : memref<18x128xf32, #tpu.memory_space<vmem>>, vector<18x128xf32>
    tpu.vector_store %arg7[%c0_36, %c0_37], %57 {strides = array<i32>} : memref<18x128xf32, #tpu.memory_space<vmem>>, vector<18x128xf32>,
    return
  }
}

</mosaic_0001>

<bundles_post_ra>
// kernel: conv_layer_forward.1
= control target key start
LH: loop header
LB: loop body
LE: loop exit
PB: predicated region body
PF: predicated region fallthrough
CT: control target
= control target key end

     0   :  { %v1045_v3 = vmov 0.0|0.0   ;;  %vm1046_vm0 = vmmov 0   ;;  %v1047_v4 = vmov 0.0   ;;  %vm279_vm1 = vcmask 1043456   ;;  %s1413_s1 = inlined_call_operand.vmem [shape: f32[384,128], index: 1, kind: input, shape index: {}]   ;;  %s1414_s0 = inlined_call_operand.vmem [shape: f32[36,384], index: 0, kind: input, shape index: {}]   ;;  %s1415_s2 = inlined_call_operand.vmem [shape: f32[1,128], index: 2, kind: input, shape index: {}]   ;;  %s1416_s6 = inlined_call_operand.vmem [shape: f32[3,18,1], index: 6, kind: input, shape index: {}]   ;;  %s1417_s3 = inlined_call_operand.vmem [shape: f32[1,128], index: 3, kind: input, shape index: {}]   ;;  %s1418_s4 = inlined_call_operand.vmem [shape: f32[1,128], index: 4, kind: input, shape index: {}]   ;;  %s1419_s5 = inlined_call_operand.vmem [shape: f32[3,18,36], index: 5, kind: input, shape index: {}]   ;;  %s1420_s7 = inlined_call_operand.vmem [shape: f32[18,128], index: 7, kind: output, shape index: {}]  }
   0x1   :  { %v57_v0 = vld [vmem:[%s1413_s1 + $0x80] sm:$0xff]  ;;  %v58_v1 = vld [vmem:[%s1413_s1 + $0x88] sm:$0xff]  ;;  %979 = vmatprep.subr.bf16.mxu1 %v1045_v3  ;;  %875 = vmatprep.mubr.msk.f32.mxu1 %vm1046_vm0, %v1047_v4  ;;  %v59_v7 = vld [vmem:[%s1413_s1 + $0x90] sm:$0xff]  ;;  %vm390_vm7 = vcmask 293888  }
   0x2   :  { %v41_v2 = vld [vmem:[%s1413_s1] sm:$0xff]  ;;  %v947_v5 = vpack.c.bf16 %v58_v1, %v57_v0  ;;  %v42_v6 = vld [vmem:[%s1413_s1 + $0x8] sm:$0xff]  ;;  %v60_v8 = vld [vmem:[%s1413_s1 + $0x98] sm:$0xff] }
   0x3   :  { %v949_v9 = vpack.c.bf16 %v42_v6, %v41_v2  ;;  %v951_v10 = vpack.c.bf16 %v60_v8, %v59_v7  ;;  %v43_v11 = vld [vmem:[%s1413_s1 + $0x10] sm:$0xff]  ;;  %v44_v12 = vld [vmem:[%s1413_s1 + $0x18] sm:$0xff]  ;;  %v73_v13 = vld [vmem:[%s1413_s1 + $0x100] sm:$0xff] }
   0x4   :  { %948 = vmatprep.subr.bf16.mxu0 %v947_v5  ;;  %v74_v14 = vld [vmem:[%s1413_s1 + $0x108] sm:$0xff]  ;;  %v61_v15 = vld [vmem:[%s1413_s1 + $0xa0] sm:$0xff]  ;;  %v953_v17 = vpack.c.bf16 %v44_v12, %v43_v11  ;;  %v75_v19 = vld [vmem:[%s1413_s1 + $0x110] sm:$0xff] }
   0x5   :  { %v62_v16 = vld [vmem:[%s1413_s1 + $0xa8] sm:$0xff]  ;;  %950 = vmatpush3.bf16.msra.mxu0 %v949_v9  ;;  %v980_v18 = vpack.c.bf16 %v74_v14, %v73_v13  ;;  %v45_v21 = vld [vmem:[%s1413_s1 + $0x20] sm:$0xff]  ;;  %v76_v23 = vld [vmem:[%s1413_s1 + $0x118] sm:$0xff] }
   0x6   :  { %952 = vmatprep.subr.bf16.mxu0 %v951_v10  ;;  %v955_v20 = vpack.c.bf16 %v62_v16, %v61_v15  ;;  %v46_v22 = vld [vmem:[%s1413_s1 + $0x28] sm:$0xff]  ;;  %v983_v24 = vpack.c.bf16 %v76_v23, %v75_v19  ;;  %v63_v25 = vld [vmem:[%s1413_s1 + $0xb0] sm:$0xff]  ;;  %v64_v26 = vld [vmem:[%s1413_s1 + $0xb8] sm:$0xff] }
   0x7   :  { %981 = vmatpush3.bf16.msra.mxu1 %v980_v18  ;;  %v77_v27 = vld [vmem:[%s1413_s1 + $0x120] sm:$0xff]  ;;  %v78_v28 = vld [vmem:[%s1413_s1 + $0x128] sm:$0xff]  ;;  %v957_v29 = vpack.c.bf16 %v46_v22, %v45_v21  ;;  %v959_v30 = vpack.c.bf16 %v64_v26, %v63_v25  ;;  %v47_v31 = vld [vmem:[%s1413_s1 + $0x30] sm:$0xff] }
   0x8   :  { %982 = vmatprep.subr.bf16.mxu1 %v1045_v3  ;;  %v48_v32 = vld [vmem:[%s1413_s1 + $0x38] sm:$0xff]  ;;  %v986_v33 = vpack.c.bf16 %v78_v28, %v77_v27  ;;  %v65_v34 = vld [vmem:[%s1413_s1 + $0xc0] sm:$0xff]  ;;  %v66_v35 = vld [vmem:[%s1413_s1 + $0xc8] sm:$0xff] }
   0x9   :  { %954 = vmatpush3.bf16.msra.mxu0 %v953_v17  ;;  %v79_v36 = vld [vmem:[%s1413_s1 + $0x130] sm:$0xff]  ;;  %v80_v37 = vld [vmem:[%s1413_s1 + $0x138] sm:$0xff]  ;;  %v961_v38 = vpack.c.bf16 %v48_v32, %v47_v31  ;;  %v963_v39 = vpack.c.bf16 %v66_v35, %v65_v34  ;;  %v49_v40 = vld [vmem:[%s1413_s1 + $0x40] sm:$0xff] }
   0xa   :  { %956 = vmatprep.subr.bf16.mxu0 %v955_v20  ;;  %v50_v41 = vld [vmem:[%s1413_s1 + $0x48] sm:$0xff]  ;;  %v989_v42 = vpack.c.bf16 %v80_v37, %v79_v36  ;;  %v67_v43 = vld [vmem:[%s1413_s1 + $0xd0] sm:$0xff]  ;;  %v68_v44 = vld [vmem:[%s1413_s1 + $0xd8] sm:$0xff] }
   0xb   :  { %984 = vmatpush3.bf16.msra.mxu1 %v983_v24  ;;  %v81_v45 = vld [vmem:[%s1413_s1 + $0x140] sm:$0xff]  ;;  %v82_v46 = vld [vmem:[%s1413_s1 + $0x148] sm:$0xff]  ;;  %v965_v48 = vpack.c.bf16 %v50_v41, %v49_v40  ;;  %v967_v49 = vpack.c.bf16 %v68_v44, %v67_v43  ;;  %v51_v50 = vld [vmem:[%s1413_s1 + $0x50] sm:$0xff] }
   0xc   :  { %985 = vmatprep.subr.bf16.mxu1 %v1045_v3  ;;  %v27_v47 = vld [vmem:[%s1414_s0 + $0x8] sm:$0xff]  ;;  %v52_v51 = vld [vmem:[%s1413_s1 + $0x58] sm:$0xff]  ;;  %v992_v52 = vpack.c.bf16 %v82_v46, %v81_v45  ;;  %v69_v53 = vld [vmem:[%s1413_s1 + $0xe0] sm:$0xff] }
   0xd   :  { %958 = vmatpush3.bf16.msra.mxu0 %v957_v29  ;;  %160 = vmatprep.mubr.f32.mxu0 %v27_v47  ;;  %v70_v54 = vld [vmem:[%s1413_s1 + $0xe8] sm:$0xff]  ;;  %v83_v55 = vld [vmem:[%s1413_s1 + $0x150] sm:$0xff]  ;;  %v84_v56 = vld [vmem:[%s1413_s1 + $0x158] sm:$0xff]  ;;  %v969_v57 = vpack.c.bf16 %v52_v51, %v51_v50 }
   0xe   :  { %960 = vmatprep.subr.bf16.mxu0 %v959_v30  ;;  %v971_v58 = vpack.c.bf16 %v70_v54, %v69_v53  ;;  %v53_v59 = vld [vmem:[%s1413_s1 + $0x60] sm:$0xff]  ;;  %v54_v60 = vld [vmem:[%s1413_s1 + $0x68] sm:$0xff]  ;;  %v995_v61 = vpack.c.bf16 %v84_v56, %v83_v55  ;;  %v71_v62 = vld [vmem:[%s1413_s1 + $0xf0] sm:$0xff] }
   0xf   :  { %987 = vmatpush3.bf16.msra.mxu1 %v986_v33  ;;  %v72_v63 = vld [vmem:[%s1413_s1 + $0xf8] sm:$0xff]  ;;  %v85_v0 = vld [vmem:[%s1413_s1 + $0x160] sm:$0xff]  ;;  %v86_v1 = vld [vmem:[%s1413_s1 + $0x168] sm:$0xff]  ;;  %v973_v2 = vpack.c.bf16 %v54_v60, %v53_v59 }
  0x10   :  { %988 = vmatprep.subr.bf16.mxu1 %v1045_v3  ;;  %v975_v5 = vpack.c.bf16 %v72_v63, %v71_v62  ;;  %v55_v6 = vld [vmem:[%s1413_s1 + $0x70] sm:$0xff]  ;;  %v56_v7 = vld [vmem:[%s1413_s1 + $0x78] sm:$0xff]  ;;  %v998_v8 = vpack.c.bf16 %v86_v1, %v85_v0  ;;  %v26_v13 = vld [vmem:[%s1414_s0] sm:$0xff] }
  0x11   :  { %962 = vmatpush3.bf16.msra.mxu0 %v961_v38  ;;  %v87_v9 = vld [vmem:[%s1413_s1 + $0x170] sm:$0xff]  ;;  %v88_v10 = vld [vmem:[%s1413_s1 + $0x178] sm:$0xff]  ;;  %v977_v11 = vpack.c.bf16 %v56_v7, %v55_v6  ;;  %v30_v14 = vld [vmem:[%s1414_s0 + $0x20] sm:$0xff] }
  0x12   :  { %964 = vmatprep.subr.bf16.mxu0 %v963_v39  ;;  %v1001_v12 = vpack.c.bf16 %v88_v10, %v87_v9  ;;  %v28_v15 = vld [vmem:[%s1414_s0 + $0x10] sm:$0xff]  ;;  %v29_v16 = vld [vmem:[%s1414_s0 + $0x18] sm:$0xff]  ;;  %v31_v18 = vld [vmem:[%s1414_s0 + $0x28] sm:$0xff] }
  0x13   :  { %990 = vmatpush3.bf16.msra.mxu1 %v989_v42  ;;  %v33_v17 = vld [vmem:[%s1414_s0 + $0x38] sm:$0xff]  ;;  %v32_v19 = vld [vmem:[%s1414_s0 + $0x30] sm:$0xff]  ;;  %v34_v21 = vld [vmem:[%s1414_s0 + $0x40] sm:$0xff]  ;;  %v1048_v42 = vmov 0  }
  0x14   :  { %991 = vmatprep.subr.bf16.mxu1 %v1045_v3  ;;  %v36_v20 = vld [vmem:[%s1414_s0 + $0x50] sm:$0xff]  ;;  %v35_v22 = vld [vmem:[%s1414_s0 + $0x48] sm:$0xff]  ;;  %v37_v24 = vld [vmem:[%s1414_s0 + $0x58] sm:$0xff]  ;;  %1031 = vset.pattern.permute.xlu0 %v1048_v42 }
  0x15   :  { %966 = vmatpush3.bf16.msra.mxu0 %v965_v48  ;;  %v39_v23 = vld [vmem:[%s1414_s0 + $0x68] sm:$0xf]  ;;  %v38_v25 = vld [vmem:[%s1414_s0 + $0x60] sm:$0xf]  ;;  %v40_v26 = vld [vmem:[%s1414_s0 + $0x70] sm:$0xf]  ;;  %1032 = vset.pattern.permute.xlu1 %v1048_v42 }
  0x16   :  { %968 = vmatprep.subr.bf16.mxu0 %v967_v49  ;;  %v720_v29 = vld [vmem:[%s1415_s2] ss:$0 sm:$0xff]  ;;  %v374_v44 = vld [vmem:[%s1416_s6 + $0x10] sm:$0x3]  ;;  %v373_v49 = vld [vmem:[%s1416_s6 + $0x8] sm:$0xff] }
  0x17   :  { %993 = vmatpush3.bf16.msra.mxu1 %v992_v52  ;;  %v372_v43 = vld [vmem:[%s1416_s6] sm:$0xff]  ;;  %387 = vperm.xlu1 %1032, %v374_v44   ;;  %v734_v50 = vld [vmem:[%s1416_s6 + $0x18] sm:$0xff]  ;;  %v736_v60 = vld [vmem:[%s1416_s6 + $0x28] sm:$0x3] }
  0x18   :  { %994 = vmatprep.subr.bf16.mxu1 %v1045_v3  ;;  %377 = vperm.xlu0 %1031, %v372_v43   ;;  %v735_v59 = vld [vmem:[%s1416_s6 + $0x20] sm:$0xff]  ;;  %v744_v7 = vld [vmem:[%s1416_s6 + $0x30] sm:$0xff] }
  0x19   :  { %970 = vmatpush3.bf16.msra.mxu0 %v969_v57 }
  0x1a   :  { %972 = vmatprep.subr.bf16.mxu0 %v971_v58 }
  0x1b   :  { %996 = vmatpush3.bf16.msra.mxu1 %v995_v61  ;;  %493 = vperm.xlu1 %1032, %v734_v50  }
  0x1c   :  { %997 = vmatprep.subr.bf16.mxu1 %v1045_v3  ;;  %382 = vperm.xlu0 %1031, %v373_v49  }
  0x1d   :  { %974 = vmatpush3.bf16.msra.mxu0 %v973_v2 }
  0x1e   :  { %976 = vmatprep.subr.bf16.mxu0 %v975_v5 }
  0x1f   :  { %999 = vmatpush3.bf16.msra.mxu1 %v998_v8  ;;  %503 = vperm.xlu1 %1032, %v736_v60   ;;  %v745_v8 = vld [vmem:[%s1416_s6 + $0x38] sm:$0xff] }
  0x20   :  { %1000 = vmatprep.subr.bf16.mxu1 %v1045_v3  ;;  %498 = vperm.xlu0 %1031, %v735_v59  }
  0x21   :  { %978 = vmatpush3.bf16.msra.mxu0 %v977_v11 }
  0x22   :  { %1003 = vmatprep.subr.bf16.mxu0 %v1045_v3 }
  0x23   :  { %1002 = vmatpush3.bf16.msra.mxu1 %v1001_v12  ;;  %613 = vperm.xlu1 %1032, %v745_v8  }
  0x24   :  { %161 = vmatmul.mubr.f32.vlgmr.msra.gmra.mrb[0].mxu0 %v26_v13  ;;  %1009 = vmatprep.subr.bf16.mxu1 %v1045_v3  ;;  %v746_v13 = vld [vmem:[%s1416_s6 + $0x40] sm:$0x3] }
  0x25   :  { %165 = vmatprep.mubr.f32.mxu0 %v30_v14  ;;  %608 = vperm.xlu0 %1031, %v744_v7  }
  0x26   :  { %876 = vmatmul.mubr.f32.vlgmr.msra.gmra.mrb[0].mxu1 %v28_v15 }
  0x27   :  { %878 = vmatprep.mubr.msk.f32.mxu1 %vm1046_vm0, %v1047_v4 }
  0x28   :  { %166 = vmatmul.mubr.f32.gmra.mrb[2].mxu0 %v29_v16 }
  0x29   :  { %170 = vmatprep.mubr.f32.mxu0 %v33_v17  ;;  %618 = vperm.xlu0 %1031, %v746_v13  }
  0x2a   :  { %879 = vmatmul.mubr.f32.gmra.mrb[2].mxu1 %v31_v18 }
  0x2b   :  { %881 = vmatprep.mubr.msk.f32.mxu1 %vm1046_vm0, %v1047_v4 }
  0x2c   :  { %171 = vmatmul.mubr.f32.gmra.mrb[4].mxu0 %v32_v19 }
  0x2d   :  { %175 = vmatprep.mubr.f32.mxu0 %v36_v20 }
  0x2e   :  { %882 = vmatmul.mubr.f32.gmra.mrb[4].mxu1 %v34_v21 }
  0x2f   :  { %884 = vmatprep.mubr.msk.f32.mxu1 %vm1046_vm0, %v1047_v4 }
  0x30   :  { %176 = vmatmul.mubr.f32.gmra.mrb[6].mxu0 %v35_v22 }
  0x31   :  { %180 = vmatprep.mubr.f32.mxu0 %v39_v23 }
  0x32   :  { %885 = vmatmul.mubr.f32.gmra.mrb[6].mxu1 %v37_v24 }
  0x33   :  { %887 = vmatprep.mubr.msk.f32.mxu1 %vm1046_vm0, %v1047_v4 }
  0x34   :  { %181 = vmatmul.mubr.f32.gmra.mrb[8].mxu0 %v38_v25 }
  0x35   :  { %900 = vmatprep.mubr.msk.f32.mxu0 %vm1046_vm0, %v1047_v4 }
  0x36   :  { %888 = vmatmul.mubr.f32.gmra.mrb[8].mxu1 %v40_v26 }
  0x37   :  { %919 = vmatprep.mubr.msk.f32.mxu1 %vm1046_vm0, %v1047_v4 }
  0xf7   :  { %v783_v27 = vpop.f32.mrb[0].mxu0 }
  0xf8   :  { %v784_v28 = vpop.f32.mrb[1].mxu0 }
  0xf9   :  { %v785_v30 = vadd.f32 %v784_v28, %v783_v27  ;;  %v252_v31 = vpop.f32.mrb[0].mxu1 }
  0xfa   :  { %v877_v32 = vpop.f32.mrb[1].mxu1 }
  0xfb   :  { %v786_v33 = vpop.f32.mrb[2].mxu0  ;;  %v163_v34 = vadd.f32 %v785_v30, %v720_v29 }
  0xfc   :  { %v787_v35 = vpop.f32.mrb[3].mxu0 }
  0xfd   :  { %v253_v36 = vadd.f32 %v252_v31, %v163_v34  ;;  %v788_v37 = vadd.f32 %v787_v35, %v786_v33  ;;  %v257_v38 = vpop.f32.mrb[2].mxu1 }
  0xfe   :  { %v880_v39 = vpop.f32.mrb[3].mxu1 }
  0xff   :  { %v789_v40 = vpop.f32.mrb[4].mxu0  ;;  %v168_v41 = vadd.f32 %v788_v37, %v720_v29 }
 0x100   :  { %v790_v45 = vpop.f32.mrb[5].mxu0 }
 0x101   :  { %v258_v46 = vadd.f32 %v257_v38, %v168_v41  ;;  %v791_v47 = vadd.f32 %v790_v45, %v789_v40  ;;  %v262_v48 = vpop.f32.mrb[4].mxu1 }
 0x102   :  { %v883_v51 = vpop.f32.mrb[5].mxu1 }
 0x103   :  { %v276_v52 = vadd.f32 %v258_v46, %v253_v36  ;;  %v792_v53 = vpop.f32.mrb[6].mxu0  ;;  %v173_v54 = vadd.f32 %v791_v47, %v720_v29 }
 0x104   :  { %v793_v55 = vpop.f32.mrb[7].mxu0 }
 0x105   :  { %v263_v56 = vadd.f32 %v262_v48, %v173_v54  ;;  %v794_v57 = vadd.f32 %v793_v55, %v792_v53  ;;  %v267_v58 = vpop.f32.mrb[6].mxu1  ;;  %v312_v48 = vld [vmem:[%s1417_s3] sm:$0x1] }
 0x106   :  { %v886_v61 = vpop.f32.mrb[7].mxu1  ;;  %v721_v53 = vld [vmem:[%s1418_s4] ss:$0 sm:$0xff] }
 0x107   :  { %v277_v62 = vadd.f32 %v276_v52, %v263_v56  ;;  %v795_v63 = vpop.f32.mrb[8].mxu0  ;;  %v178_v0 = vadd.f32 %v794_v57, %v720_v29 }
 0x108   :  { %v796_v1 = vpop.f32.mrb[9].mxu0 }
 0x109   :  { %v268_v2 = vadd.f32 %v267_v58, %v178_v0  ;;  %v797_v5 = vadd.f32 %v796_v1, %v795_v63  ;;  %v272_v6 = vpop.f32.mrb[8].mxu1 }
 0x10a   :  { %v889_v9 = vpop.f32.mrb[9].mxu1 }
 0x10b   :  { %v278_v10 = vadd.f32 %v277_v62, %v268_v2  ;;  %v183_v11 = vadd.f32 %v797_v5, %v720_v29 }
 0x10d   :  { %v273_v12 = vadd.f32 %v272_v6, %v183_v11 }
 0x10f   :  { %v280_v14 = vsel %vm279_vm1, %v273_v12, 0.0 }
 0x110   :  { %v281_v15 = vadd.f32 %v280_v14, %v278_v10 }
 0x112   :  { %v282_v16 = vrot.slane %v281_v15, 4 }
 0x114   :  { %v283_v17 = vadd.f32 %v282_v16, %v281_v15 }
 0x116   :  { %v284_v18 = vrot.slane %v283_v17, 2 }
 0x118   :  { %v285_v19 = vadd.f32 %v284_v18, %v283_v17 }
 0x11a   :  { %v286_v20 = vrot.slane %v285_v19, 1 }
 0x11c   :  { %v287_v21 = vadd.f32 %v286_v20, %v285_v19 }
 0x11e   :  { %v289_v22 = vmul.f32 0.027777778, %v287_v21 }
 0x120   :  { %v290_v23 = vsub.f32 %v253_v36, %v289_v22  ;;  %v291_v24 = vsub.f32 %v258_v46, %v289_v22  ;;  %v292_v25 = vsub.f32 %v263_v56, %v289_v22  ;;  %v293_v26 = vsub.f32 %v268_v2, %v289_v22 }
 0x121   :  { %v294_v27 = vsub.f32 %v273_v12, %v289_v22  ;;  %v317_v46 = vlaneseq }
 0x122   :  { %v295_v28 = vmul.f32 %v290_v23, %v290_v23  ;;  %v296_v29 = vmul.f32 %v291_v24, %v291_v24  ;;  %v297_v30 = vmul.f32 %v292_v25, %v292_v25  ;;  %v298_v33 = vmul.f32 %v293_v26, %v293_v26 }
 0x123   :  { %v299_v32 = vmul.f32 %v294_v27, %v294_v27  ;;  %v318_v47 = vshrl.u32 %v317_v46, 7 }
 0x124   :  { %v300_v31 = vadd.f32 %v296_v29, %v295_v28  ;;  %v369_v28 = vld [vmem:[%s1419_s5] sm:$0xff]  ;;  %v731_v29 = vld [vmem:[%s1419_s5 + $0x18] sm:$0xff] }
 0x125   :  { %v303_v37 = vsel %vm279_vm1, %v299_v32, 0.0  ;;  %v319_v49 = vsub.s32 0, %v318_v47  ;;  %v732_v32 = vld [vmem:[%s1419_s5 + $0x20] sm:$0xff] }
 0x126   :  { %v301_v34 = vadd.f32 %v300_v31, %v297_v30  ;;  %v370_v31 = vld [vmem:[%s1419_s5 + $0x8] sm:$0xff] }
 0x128   :  { %v302_v35 = vadd.f32 %v301_v34, %v298_v33  ;;  %v371_v33 = vld [vmem:[%s1419_s5 + $0x10] sm:$0x3]  ;;  %v733_v34 = vld [vmem:[%s1419_s5 + $0x28] sm:$0x3] }
 0x12a   :  { %v304_v38 = vadd.f32 %v303_v37, %v302_v35  ;;  %v742_v35 = vld [vmem:[%s1419_s5 + $0x38] sm:$0xff]  ;;  %v743_v37 = vld [vmem:[%s1419_s5 + $0x40] sm:$0x3] }
 0x12c   :  { %v305_v39 = vrot.slane %v304_v38, 4 }
 0x12e   :  { %v306_v40 = vadd.f32 %v305_v39, %v304_v38  ;;  %v378_v38 = vpop.permute.xlu0 %377  ;;  %v388_v39 = vpop.permute.xlu1 %387 }
 0x130   :  { %v307_v41 = vrot.slane %v306_v40, 2 }
 0x132   :  { %v308_v42 = vadd.f32 %v307_v41, %v306_v40  ;;  %v383_v40 = vpop.permute.xlu0 %382  ;;  %v494_v41 = vpop.permute.xlu1 %493 }
 0x134   :  { %v309_v36 = vrot.slane %v308_v42, 1 }
 0x136   :  { %v310_v43 = vadd.f32 %v309_v36, %v308_v42  ;;  %v499_v47 = vpop.permute.xlu0 %498 }
 0x138   :  { %v311_v44 = vmul.f32 0.027777778, %v310_v43 }
 0x13a   :  { %v313_v45 = vadd.f32 1e-05, %v311_v44 }
 0x13c   :  { %1033 = vrsqrt.f32 %v313_v45 }
 0x146   :  { %v1034_v50 = vpop.eup %1033 }
 0x147   :  { %v315_v51 = vmul.f32 %v1034_v50, %v312_v48 }
 0x149   :  { %v320_v52 = vrot.slane %v315_v51, %v319_v49  ;;  %v504_v49 = vpop.permute.xlu1 %503 }
 0x14b   :  { %v326_v54 = vmul.f32 %v320_v52, %v294_v27  ;;  %v322_v55 = vmul.f32 %v320_v52, %v290_v23  ;;  %v323_v56 = vmul.f32 %v320_v52, %v291_v24  ;;  %v324_v57 = vmul.f32 %v320_v52, %v292_v25 }
 0x14c   :  { %v325_v58 = vmul.f32 %v320_v52, %v293_v26 }
 0x14d   :  { %v334_v59 = vadd.f32 %v721_v53, %v322_v55  ;;  %v335_v60 = vadd.f32 %v721_v53, %v323_v56  ;;  %v336_v61 = vadd.f32 %v721_v53, %v324_v57  ;;  %v338_v63 = vadd.f32 %v721_v53, %v326_v54 }
 0x14e   :  { %v337_v62 = vadd.f32 %v721_v53, %v325_v58 }
 0x14f   :  { %v344_v0 = vmin.f32 %v334_v59, 0.0  ;;  %v345_v1 = vmin.f32 %v335_v60, 0.0  ;;  %v346_v2 = vmin.f32 %v336_v61, 0.0  ;;  %v348_v9 = vmin.f32 %v338_v63, 0.0 }
 0x150   :  { %v347_v6 = vmin.f32 %v337_v62, 0.0  ;;  %vm339_vm2 = vcmp.gt.f32.partialorder %v334_v59, 0.0  ;;  %vm340_vm3 = vcmp.gt.f32.partialorder %v335_v60, 0.0  ;;  %vm341_vm4 = vcmp.gt.f32.partialorder %v336_v61, 0.0 }
 0x151   :  { %v349_v5 = vmul.f32 1.442695, %v344_v0  ;;  %v351_v7 = vmul.f32 1.442695, %v345_v1  ;;  %v353_v8 = vmul.f32 1.442695, %v346_v2  ;;  %v614_v0 = vpop.permute.xlu1 %613 }
 0x152   :  { %v355_v10 = vmul.f32 1.442695, %v347_v6  ;;  %v357_v11 = vmul.f32 1.442695, %v348_v9  ;;  %vm342_vm5 = vcmp.gt.f32.partialorder %v337_v62, 0.0  ;;  %vm343_vm6 = vcmp.gt.f32.partialorder %v338_v63, 0.0 }
 0x153   :  { %1035 = vpow2.f32 %v349_v5 }
 0x154   :  { %1037 = vpow2.f32 %v351_v7 }
 0x155   :  { %1039 = vpow2.f32 %v353_v8 }
 0x156   :  { %1041 = vpow2.f32 %v355_v10 }
 0x157   :  { %1043 = vpow2.f32 %v357_v11 }
 0x15d   :  { %v1036_v12 = vpop.eup %1035 }
 0x15e   :  { %v1038_v13 = vpop.eup %1037  ;;  %v722_v14 = vadd.f32 -1.0, %v1036_v12 }
 0x15f   :  { %v1040_v15 = vpop.eup %1039  ;;  %v723_v16 = vadd.f32 -1.0, %v1038_v13 }
 0x160   :  { %v1042_v17 = vpop.eup %1041  ;;  %v364_v18 = vsel %vm339_vm2, %v334_v59, %v722_v14  ;;  %v724_v19 = vadd.f32 -1.0, %v1040_v15 }
 0x161   :  { %v365_v20 = vsel %vm340_vm3, %v335_v60, %v723_v16  ;;  %v725_v21 = vadd.f32 -1.0, %v1042_v17  ;;  %v1044_v25 = vpop.eup %1043 }
 0x162   :  { %v1004_v22 = vpack.c.bf16 %v365_v20, %v364_v18  ;;  %v366_v23 = vsel %vm341_vm4, %v336_v61, %v724_v19  ;;  %v726_v27 = vadd.f32 -1.0, %v1044_v25 }
 0x163   :  { %v367_v24 = vsel %vm342_vm5, %v337_v62, %v725_v21  ;;  %v609_v62 = vpop.permute.xlu0 %608 }
 0x164   :  { %1005 = vmatpush3.bf16.msra.mxu0 %v1004_v22  ;;  %1011 = vmatpush3.bf16.msra.mxu1 %v1004_v22  ;;  %v1007_v26 = vpack.c.bf16 %v367_v24, %v366_v23  ;;  %v368_v30 = vsel %vm343_vm6, %v338_v63, %v726_v27 }
 0x165   :  { %1006 = vmatprep.subr.bf16.mxu0 %v1045_v3  ;;  %1012 = vmatprep.subr.bf16.mxu1 %v1045_v3 }
 0x167   :  { %v619_v11 = vpop.permute.xlu0 %618 }
 0x168   :  { %1008 = vmatpush3.bf16.msra.mxu0 %v1007_v26  ;;  %1014 = vmatpush3.bf16.msra.mxu1 %v1007_v26 }
 0x169   :  { %898 = vmatprep.subr.mxu0 %v1047_v4  ;;  %917 = vmatprep.subr.mxu1 %v1047_v4 }
 0x16c   :  { %899 = vmatpush3.msk.msra.mxu0 %vm279_vm1, %v368_v30  ;;  %918 = vmatpush3.msk.msra.mxu1 %vm279_vm1, %v368_v30 }
 0x16d   :  { %901 = vmatmul.mubr.msk.f32.vlgmr.msra.gmra.mrb[10].mxu0 %vm390_vm7, %v369_v28  ;;  %920 = vmatmul.mubr.msk.f32.vlgmr.msra.gmra.mrb[10].mxu1 %vm390_vm7, %v731_v29 }
 0x16e   :  { %1015 = vmatprep.subr.bf16.mxu0 %v1045_v3  ;;  %1021 = vmatprep.subr.bf16.mxu1 %v1045_v3 }
 0x16f   :  { %1017 = vmatpush3.bf16.msra.mxu0 %v1004_v22  ;;  %1024 = vmatpush3.bf16.msra.mxu1 %v1004_v22 }
 0x170   :  { %903 = vmatprep.mubr.msk.f32.mxu0 %vm1046_vm0, %v1047_v4  ;;  %922 = vmatprep.mubr.msk.f32.mxu1 %vm1046_vm0, %v1047_v4 }
 0x171   :  { %904 = vmatmul.mubr.msk.f32.gmra.mrb[12].mxu0 %vm390_vm7, %v370_v31  ;;  %923 = vmatmul.mubr.msk.f32.gmra.mrb[12].mxu1 %vm390_vm7, %v732_v32 }
 0x172   :  { %1018 = vmatprep.subr.bf16.mxu0 %v1045_v3  ;;  %1022 = vmatprep.subr.bf16.mxu1 %v1045_v3  ;;  %v741_v3 = vld [vmem:[%s1419_s5 + $0x30] sm:$0xff] }
 0x173   :  { %1020 = vmatpush3.bf16.msra.mxu0 %v1007_v26  ;;  %1025 = vmatpush3.bf16.msra.mxu1 %v1007_v26 }
 0x174   :  { %906 = vmatprep.mubr.msk.f32.mxu0 %vm1046_vm0, %v1047_v4  ;;  %925 = vmatprep.mubr.msk.f32.mxu1 %vm1046_vm0, %v1047_v4 }
 0x175   :  { %907 = vmatmul.mubr.msk.f32.gmra.mrb[14].mxu0 %vm390_vm7, %v371_v33  ;;  %926 = vmatmul.mubr.msk.f32.gmra.mrb[14].mxu1 %vm390_vm7, %v733_v34 }
 0x176   :  { %936 = vmatprep.subr.mxu0 %v1047_v4  ;;  %1023 = vmatprep.subr.mxu1 %v1047_v4 }
 0x177   :  { %937 = vmatpush3.msk.msra.mxu0 %vm279_vm1, %v368_v30  ;;  %1026 = vmatpush3.msk.msra.mxu1 %vm279_vm1, %v368_v30 }
 0x178   :  { %938 = vmatprep.mubr.msk.f32.mxu0 %vm1046_vm0, %v1047_v4  ;;  %941 = vmatprep.mubr.msk.f32.mxu1 %vm1046_vm0, %v1047_v4 }
 0x179   :  { %939 = vmatmul.mubr.msk.f32.vlgmr.msra.gmra.mrb[16].mxu0 %vm390_vm7, %v741_v3  ;;  %942 = vmatmul.mubr.msk.f32.vlgmr.msra.gmra.mrb[16].mxu1 %vm390_vm7, %v742_v35 }
 0x17a   :  { %944 = vmatprep.mubr.msk.f32.mxu1 %vm1046_vm0, %v1047_v4 }
 0x17d   :  { %945 = vmatmul.mubr.msk.f32.gmra.mrb[18].mxu1 %vm390_vm7, %v743_v37 }
 0x240   :  { %v469_v42 = vpop.f32.mrb[10].mxu0  ;;  %v581_v36 = vpop.f32.mrb[10].mxu1 }
 0x241   :  { %v470_v43 = vadd.f32 %v469_v42, %v378_v38  ;;  %v902_v44 = vpop.f32.mrb[11].mxu0  ;;  %v582_v45 = vadd.f32 %v581_v36, %v494_v41  ;;  %v921_v46 = vpop.f32.mrb[11].mxu1 }
 0x243   :  { %v595_v48 = vmax.f32 %v470_v43, %v582_v45 }
 0x244   :  { %v474_v4 = vpop.f32.mrb[12].mxu0  ;;  %v586_v50 = vpop.f32.mrb[12].mxu1 }
 0x245   :  { %v475_v51 = vadd.f32 %v474_v4, %v383_v40  ;;  %v905_v52 = vpop.f32.mrb[13].mxu0  ;;  %v587_v53 = vadd.f32 %v586_v50, %v499_v47  ;;  %v924_v54 = vpop.f32.mrb[13].mxu1 }
 0x247   :  { %v596_v55 = vmax.f32 %v475_v51, %v587_v53 }
 0x248   :  { %v479_v56 = vpop.f32.mrb[14].mxu0  ;;  %v591_v57 = vpop.f32.mrb[14].mxu1 }
 0x249   :  { %v480_v58 = vadd.f32 %v479_v56, %v388_v39  ;;  %v908_v59 = vpop.f32.mrb[15].mxu0  ;;  %v592_v60 = vadd.f32 %v591_v57, %v504_v49  ;;  %v927_v61 = vpop.f32.mrb[15].mxu1 }
 0x24b   :  { %v597_v63 = vmax.f32 %v480_v58, %v592_v60 }
 0x24c   :  { %v696_v1 = vpop.f32.mrb[16].mxu0  ;;  %v701_v2 = vpop.f32.mrb[16].mxu1 }
 0x24d   :  { %v697_v5 = vadd.f32 %v696_v1, %v609_v62  ;;  %v702_v6 = vadd.f32 %v701_v2, %v614_v0  ;;  %v943_v7 = vpop.f32.mrb[17].mxu1  ;;  %v940_v8 = vpop.f32.mrb[17].mxu0 }
 0x24f   :  { %v710_v9 = vmax.f32 %v595_v48, %v697_v5  ;;  %v711_v10 = vmax.f32 %v596_v55, %v702_v6 }
 0x250   :  { %v706_v12 = vpop.f32.mrb[18].mxu1 }
 0x251   :  { %713 = vst [vmem:[%s1420_s7] sm:$0xff] %v710_v9  ;;  %714 = vst [vmem:[%s1420_s7 + $0x8] sm:$0xff] %v711_v10  ;;  %v707_v13 = vadd.f32 %v706_v12, %v619_v11  ;;  %v946_v14 = vpop.f32.mrb[19].mxu1 }
 0x253   :  { %v712_v15 = vmax.f32 %v597_v63, %v707_v13 }
 0x255   :  { %715 = vst [vmem:[%s1420_s7 + $0x10] sm:$0x3] %v712_v15 }

</bundles_post_ra>
